<compile_context>
chip_gen: v5e
topology: v5e:2x2
jax: 0.10.0
libtpu: 0.0.40
codegen_flags: <defaults>
</compile_context>

<pallas_src>
import functools

import jax
import jax.numpy as jnp
from jax import lax
from jax.experimental import pallas as pl
from jax.experimental.pallas import tpu as pltpu

_QB = 128.0        # 2 ** (bit - 1), bit = 8
_LN_EPS = 1e-5     # torch F.layer_norm default eps
_MIB = 1024 * 1024


def _round_up(x, m):
    return ((x + m - 1) // m) * m


def _vmem_bytes():
    """Physical VMEM per TensorCore for the current backend."""
    try:
        kind = jax.devices()[0].device_kind.lower()
    except Exception:  # pragma: no cover - defensive
        kind = ""
    if "v2" in kind or "v3" in kind:
        return 16 * _MIB
    if "7" in kind:                      # v7x: 64 MiB per TensorCore
        return 64 * _MIB
    return 128 * _MIB                    # v5e / v6e


def _choose_tiles(n, d, c, c_mat, x_bytes, budget, tile_cap):
    """Row-tile sizes for the two passes, budgeting ALL per-step VMEM buffers."""
    n8 = _round_up(n, 8)
    # pass 2 per step: x double-buffer, f32 out double-buffer, f32 LN working
    # tile, f32 MXU-result tile; plus (double-buffered) resident weights/bias.
    resident = 2 * (d * c_mat * 2 + c * 4 + 128 * 4)
    per_row2 = 2 * d * x_bytes + 2 * 4 * c + 4 * d + 4 * c_mat
    tn2 = max(8, (max(budget - resident, 8 * per_row2) // per_row2) // 8 * 8)
    tn2 = min(tn2, 1024, n8)
    # pass 1 per step: only the x double-buffer + f32 working tile + tiny out,
    # so it gets a (larger) tile of its own to amortize per-step overhead.
    per_row1 = 2 * d * x_bytes + 4 * d
    tn1 = max(8, (budget // per_row1) // 8 * 8)
    tn1 = min(tn1, 2048, n8)
    if tile_cap is not None:             # test/tuning knob
        tn2 = max(8, min(tn2, _round_up(tile_cap, 8)))
        tn1 = max(8, min(tn1, 2 * _round_up(tile_cap, 8)))
    return tn1, tn2


def _absmax_kernel(x_ref, m_ref, *, n_valid, tile_n):
    """Per-tile max |layer_norm(x)| with out-of-range tail rows masked out."""
    x = x_ref[...].astype(jnp.float32)                            # (TN1, D)
    row = lax.broadcasted_iota(jnp.int32, (x.shape[0], 1), 0)
    valid = (pl.program_id(0) * tile_n + row) < n_valid           # (TN1, 1)
    mu = jnp.mean(x, axis=-1, keepdims=True)
    xc = x - mu
    var = jnp.mean(xc * xc, axis=-1, keepdims=True)
    a = jnp.abs(xc) * lax.rsqrt(var + _LN_EPS)                    # |layer_norm(x)|
    a = jnp.where(valid, a, 0.0)                                  # garbage rows -> 0
    m_ref[...] = jnp.full(m_ref.shape, jnp.max(a), dtype=m_ref.dtype)


def _proj_kernel(scale_ref, x_ref, wt_ref, b_ref, o_ref, *, c_out):
    qscale = scale_ref[0]          # 128 / max|layer_norm(x)|     (SMEM scalar)
    oscale = scale_ref[1]          # (max / 128) * beta           (SMEM scalar)

    # layer_norm over last dim (no affine), recomputed per tile (cheap VPU)
    x = x_ref[...].astype(jnp.float32)                            # (TN2, D)
    mu = jnp.mean(x, axis=-1, keepdims=True)
    xc = x - mu
    var = jnp.mean(xc * xc, axis=-1, keepdims=True)
    xn = xc * lax.rsqrt(var + _LN_EPS)

    # absmax quantization with the GLOBAL scale from pass 1
    q = jnp.round(xn * qscale)
    # torch casts to int8 and back: the value rounding to +128 wraps to -128
    q = jnp.where(q >= 128.0, q - 256.0, q)

    # q (ints in [-128,127]) and wq ({-1,0,+1}) are exact in bf16, so the bf16
    # MXU path with f32 accumulation is bit-identical to an f32/int matmul.
    # TODO(synk): int8 MXU path (preferred_element_type=int32) on v5e/v6e for
    # ~2x MXU throughput once C and D are large enough to be compute-bound.
    out = jnp.dot(q.astype(jnp.bfloat16), wt_ref[...],
                  preferred_element_type=jnp.float32)             # (TN2, C_mat)
    if c_out != out.shape[-1]:
        out = out[:, :c_out]       # drop MXU padding lanes before the epilogue
    o_ref[...] = (out * oscale + b_ref[...]).astype(o_ref.dtype)


def _projection_layer(x, weights, bias, tile_cap=None):
    """x: (B, S, D); weights: (C, D); bias: (C,). Returns (B, S, C) float32."""
    B, S, D = x.shape
    C = weights.shape[0]
    N = B * S

    phys = _vmem_bytes()
    budget = (phys * 3) // 5                      # per-step working-set target
    vmem_limit = int(min((phys * 3) // 4, budget + 16 * _MIB))

    C_mat = _round_up(max(C, 128), 128)           # MXU / weight lane width
    TN1, TN2 = _choose_tiles(N, D, C, C_mat, x.dtype.itemsize, budget, tile_cap)
    G1 = pl.cdiv(N, TN1)
    G2 = pl.cdiv(N, TN2)

    # x stays in its native dtype (no f32 upcast copy) and is NOT padded:
    # boundary tiles are handled by in-kernel masking (pass 1) and masked
    # output stores (pass 2), so x is only ever read twice from HBM.
    xf = x.reshape(N, D)

    # ---- hoisted weight quantization (once, outside the per-tile body) ----
    w = weights.astype(jnp.float32)
    wq = jnp.sign(w - jnp.mean(w))                                # (C, D) in {-1,0,+1}
    beta = jnp.sum(jnp.abs(w)) / (C * D)
    wt = jnp.pad(wq.T, ((0, 0), (0, C_mat - C))).astype(jnp.bfloat16)  # (D, C_mat)
    bias_r = bias.astype(jnp.float32).reshape(1, C)

    # ---- pass 1: global max |layer_norm(x)| via per-tile maxes ----
    tile_max = pl.pallas_call(
        functools.partial(_absmax_kernel, n_valid=N, tile_n=TN1),
        out_shape=jax.ShapeDtypeStruct((G1, 8, 128), jnp.float32),
        grid=(G1,),
        in_specs=[pl.BlockSpec((TN1, D), lambda i: (i, 0))],
        out_specs=pl.BlockSpec((1, 8, 128), lambda i: (i, 0, 0)),
        compiler_params=pltpu.CompilerParams(
            dimension_semantics=("parallel",),
            vmem_limit_bytes=vmem_limit),
    )(xf)
    max_val = jnp.maximum(jnp.max(tile_max), 1e-30)   # guard all-constant input

    # fused scalar factors, handed to pass 2 through SMEM
    qscale = _QB / max_val
    oscale = (max_val / _QB) * beta
    scales = jnp.stack([qscale, oscale]).astype(jnp.float32)

    # ---- pass 2: LN + quantize + bf16 MXU matmul + scale/bias epilogue ----
    out = pl.pallas_call(
        functools.partial(_proj_kernel, c_out=C),
        out_shape=jax.ShapeDtypeStruct((N, C), jnp.float32),
        grid=(G2,),
        in_specs=[
            pl.BlockSpec(memory_space=pltpu.MemorySpace.SMEM),    # scales
            pl.BlockSpec((TN2, D), lambda i: (i, 0)),             # x tiles
            # Constant block index => the pipeline keeps these resident and
            # skips per-step re-DMA; both buffers are counted in the budget.
            pl.BlockSpec((D, C_mat), lambda i: (0, 0)),           # quantized weights
            pl.BlockSpec((1, C), lambda i: (0, 0)),               # bias
        ],
        out_specs=pl.BlockSpec((TN2, C), lambda i: (i, 0)),
        compiler_params=pltpu.CompilerParams(
            dimension_semantics=("parallel",),
            vmem_limit_bytes=vmem_limit),
    )(scales, xf, wt, bias_r)

    return out.reshape(B, S, C)


projection_layer = jax.jit(_projection_layer, static_argnames=("tile_cap",))


def projection_layer_ref(x, weights, bias):
    """Pure-JAX reference mirroring the PyTorch module semantics."""
    mu = jnp.mean(x, axis=-1, keepdims=True)
    var = jnp.mean(jnp.square(x - mu), axis=-1, keepdims=True)
    xn = (x - mu) * lax.rsqrt(var + _LN_EPS)
    max_val = jnp.max(jnp.abs(xn))
    q = jnp.round(xn * (_QB / max_val))
    q = jnp.where(q >= 128.0, q - 256.0, q)
    dequant = max_val / _QB
    wq = jnp.sign(weights - jnp.mean(weights))
    beta = jnp.sum(jnp.abs(weights)) / (weights.shape[0] * weights.shape[1])
    out = jnp.einsum("bsd,cd->bsc", q, wq) * dequant * beta
    return out + bias


if __name__ == "__main__":
    # Small shape matching the module defaults (single tile per pass).
    k_x, k_w, k_b = jax.random.split(jax.random.PRNGKey(0), 3)
    B, S, d_model, num_classes = 2, 8, 32, 2
    x = jax.random.normal(k_x, (B, S, d_model), dtype=jnp.float32)
    weights = jax.random.normal(k_w, (num_classes, d_model), dtype=jnp.float32)
    bias = jax.random.normal(k_b, (num_classes,), dtype=jnp.float32)

    out = jax.block_until_ready(projection_layer(x, weights, bias))
    ref = projection_layer_ref(x, weights, bias)
    assert out.shape == (B, S, num_classes)
    assert jnp.allclose(out, ref, atol=1e-4, rtol=1e-4)

    # Larger shape forcing multi-tile grids, boundary-tile masking in both
    # passes (N not a multiple of the tiles) and MXU lane padding (C < 128).
    k_x2, k_w2, k_b2 = jax.random.split(jax.random.PRNGKey(1), 3)
    B2, S2, D2, C2 = 2, 200, 128, 5
    x2 = jax.random.normal(k_x2, (B2, S2, D2), dtype=jnp.float32)
    w2 = jax.random.normal(k_w2, (C2, D2), dtype=jnp.float32)
    b2 = jax.random.normal(k_b2, (C2,), dtype=jnp.float32)

    out2 = jax.block_until_ready(projection_layer(x2, w2, b2, tile_cap=128))
    ref2 = projection_layer_ref(x2, w2, b2)
    assert out2.shape == (B2, S2, C2)
    assert jnp.allclose(out2, ref2, atol=1e-4, rtol=1e-4)

    print("KERNEL_OK")
</pallas_src>

<mosaic_0001>
module attributes {stable_mosaic.version = 11 : i64} {
  func.func @_absmax_kernel(%arg0: i32, %arg1: memref<16x32xf32, #tpu.memory_space<vmem>>, %arg2: memref<1x8x128xf32, #tpu.memory_space<vmem>>) attributes {dimension_semantics = [#tpu.dimension_semantics<parallel>], iteration_bounds = array<i64: 1>, scalar_prefetch = 0 : i64, scratch_operands = 0 : i64, tpu.core_type = #tpu.core_type<tc>, window_params = [{transform_indices = @transform_0, window_bounds = array<i64: 16, 32>}, {transform_indices = @transform_1, window_bounds = array<i64: 1, 8, 128>}]} {
    %c0 = arith.constant 0 : index
    %c0_0 = arith.constant 0 : index
    %0 = vector.load %arg1[%c0, %c0_0] : memref<16x32xf32, #tpu.memory_space<vmem>>, vector<16x32xf32>
    %1 = tpu.iota {dimensions = array<i32: 0>} : vector<16x1xi32>
    %c16_i32 = arith.constant 16 : i32
    %2 = arith.muli %arg0, %c16_i32 : i32
    %3 = vector.broadcast %2 : i32 to vector<16x1xi32>
    %4 = arith.addi %3, %1 : vector<16x1xi32>
    %c16_i32_1 = arith.constant 16 : i32
    %5 = vector.broadcast %c16_i32_1 : i32 to vector<16x1xi32>
    %6 = arith.cmpi slt, %4, %5 : vector<16x1xi32>
    %cst = arith.constant dense<0.000000e+00> : vector<16xf32>
    %7 = vector.multi_reduction <add>, %0, %cst [1] : vector<16x32xf32> to vector<16xf32>
    %8 = vector.shape_cast %7 : vector<16xf32> to vector<16x1xf32>
    %cst_2 = arith.constant 3.200000e+01 : f32
    %9 = vector.broadcast %cst_2 : f32 to vector<16x1xf32>
    %10 = arith.divf %8, %9 : vector<16x1xf32>
    %11 = vector.broadcast %10 : vector<16x1xf32> to vector<16x32xf32>
    %12 = arith.subf %0, %11 : vector<16x32xf32>
    %13 = arith.mulf %12, %12 : vector<16x32xf32>
    %cst_3 = arith.constant dense<0.000000e+00> : vector<16xf32>
    %14 = vector.multi_reduction <add>, %13, %cst_3 [1] : vector<16x32xf32> to vector<16xf32>
    %15 = vector.shape_cast %14 : vector<16xf32> to vector<16x1xf32>
    %cst_4 = arith.constant 3.200000e+01 : f32
    %16 = vector.broadcast %cst_4 : f32 to vector<16x1xf32>
    %17 = arith.divf %15, %16 : vector<16x1xf32>
    %18 = math.absf %12 : vector<16x32xf32>
    %cst_5 = arith.constant 9.99999974E-6 : f32
    %19 = vector.broadcast %cst_5 : f32 to vector<16x1xf32>
    %20 = arith.addf %17, %19 : vector<16x1xf32>
    %21 = math.rsqrt %20 : vector<16x1xf32>
    %22 = vector.broadcast %21 : vector<16x1xf32> to vector<16x32xf32>
    %23 = arith.mulf %18, %22 : vector<16x32xf32>
    %cst_6 = arith.constant 0.000000e+00 : f32
    %24 = vector.shape_cast %6 : vector<16x1xi1> to vector<16x1xi1>
    %25 = vector.broadcast %24 : vector<16x1xi1> to vector<16x32xi1>
    %26 = vector.broadcast %cst_6 : f32 to vector<16x32xf32>
    %27 = arith.select %25, %23, %26 : vector<16x32xi1>, vector<16x32xf32>
    %28 = vector.shape_cast %27 : vector<16x32xf32> to vector<1x16x32xf32>
    %cst_7 = arith.constant dense<0xFF800000> : vector<1xf32>
    %29 = vector.multi_reduction <maximumf>, %28, %cst_7 [1, 2] : vector<1x16x32xf32> to vector<1xf32>
    %30 = vector.shape_cast %29 : vector<1xf32> to vector<1x1x1xf32>
    %31 = vector.extract %30[0, 0, 0] : f32 from vector<1x1x1xf32>
    %32 = vector.broadcast %31 : f32 to vector<1x8x128xf32>
    %c0_8 = arith.constant 0 : index
    %c0_9 = arith.constant 0 : index
    %c0_10 = arith.constant 0 : index
    %33 = vector.load %arg2[%c0_8, %c0_9, %c0_10] : memref<1x8x128xf32, #tpu.memory_space<vmem>>, vector<1x8x128xf32>
    tpu.vector_store %arg2[%c0_8, %c0_9, %c0_10], %32 {strides = array<i32>} : memref<1x8x128xf32, #tpu.memory_space<vmem>>, vector<1x8x128xf32>,
    return
  }
  func.func @transform_0(%arg0: i32) -> (i32, i32) {
    %c0_i32 = arith.constant 0 : i32
    %c0_i32_0 = arith.constant 0 : i32
    return %arg0, %c0_i32 : i32, i32
  }
  func.func @transform_1(%arg0: i32) -> (i32, i32, i32) {
    %c0_i32 = arith.constant 0 : i32
    %c0_i32_0 = arith.constant 0 : i32
    %c0_i32_1 = arith.constant 0 : i32
    return %arg0, %c0_i32, %c0_i32_0 : i32, i32, i32
  }
}

module attributes {stable_mosaic.version = 11 : i64} {
  func.func @_proj_kernel(%arg0: i32, %arg1: memref<2xf32, #tpu.memory_space<smem>>, %arg2: memref<16x32xf32, #tpu.memory_space<vmem>>, %arg3: memref<32x128xbf16, #tpu.memory_space<vmem>>, %arg4: memref<1x2xf32, #tpu.memory_space<vmem>>, %arg5: memref<16x2xf32, #tpu.memory_space<vmem>>) attributes {dimension_semantics = [#tpu.dimension_semantics<parallel>], iteration_bounds = array<i64: 1>, scalar_prefetch = 0 : i64, scratch_operands = 0 : i64, tpu.core_type = #tpu.core_type<tc>, window_params = [{transform_indices = @transform_0, window_bounds = array<i64: 2>}, {transform_indices = @transform_1, window_bounds = array<i64: 16, 32>}, {pipeline_mode = #tpu.pipeline_mode<synchronous>, transform_indices = @transform_2, window_bounds = array<i64: 32, 128>}, {pipeline_mode = #tpu.pipeline_mode<synchronous>, transform_indices = @transform_3, window_bounds = array<i64: 1, 2>}, {transform_indices = @transform_4, window_bounds = array<i64: 16, 2>}]} {
    %c0 = arith.constant 0 : index
    %0 = memref.load %arg1[%c0] : memref<2xf32, #tpu.memory_space<smem>>
    %c1 = arith.constant 1 : index
    %1 = memref.load %arg1[%c1] : memref<2xf32, #tpu.memory_space<smem>>
    %c0_0 = arith.constant 0 : index
    %c0_1 = arith.constant 0 : index
    %2 = vector.load %arg2[%c0_0, %c0_1] : memref<16x32xf32, #tpu.memory_space<vmem>>, vector<16x32xf32>
    %cst = arith.constant dense<0.000000e+00> : vector<16xf32>
    %3 = vector.multi_reduction <add>, %2, %cst [1] : vector<16x32xf32> to vector<16xf32>
    %4 = vector.shape_cast %3 : vector<16xf32> to vector<16x1xf32>
    %cst_2 = arith.constant 3.200000e+01 : f32
    %5 = vector.broadcast %cst_2 : f32 to vector<16x1xf32>
    %6 = arith.divf %4, %5 : vector<16x1xf32>
    %7 = vector.broadcast %6 : vector<16x1xf32> to vector<16x32xf32>
    %8 = arith.subf %2, %7 : vector<16x32xf32>
    %9 = arith.mulf %8, %8 : vector<16x32xf32>
    %cst_3 = arith.constant dense<0.000000e+00> : vector<16xf32>
    %10 = vector.multi_reduction <add>, %9, %cst_3 [1] : vector<16x32xf32> to vector<16xf32>
    %11 = vector.shape_cast %10 : vector<16xf32> to vector<16x1xf32>
    %cst_4 = arith.constant 3.200000e+01 : f32
    %12 = vector.broadcast %cst_4 : f32 to vector<16x1xf32>
    %13 = arith.divf %11, %12 : vector<16x1xf32>
    %cst_5 = arith.constant 9.99999974E-6 : f32
    %14 = vector.broadcast %cst_5 : f32 to vector<16x1xf32>
    %15 = arith.addf %13, %14 : vector<16x1xf32>
    %16 = math.rsqrt %15 : vector<16x1xf32>
    %17 = vector.broadcast %16 : vector<16x1xf32> to vector<16x32xf32>
    %18 = arith.mulf %8, %17 : vector<16x32xf32>
    %19 = vector.broadcast %0 : f32 to vector<16x32xf32>
    %20 = arith.mulf %18, %19 : vector<16x32xf32>
    %21 = math.roundeven %20 : vector<16x32xf32>
    %cst_6 = arith.constant 1.280000e+02 : f32
    %22 = vector.broadcast %cst_6 : f32 to vector<16x32xf32>
    %23 = arith.cmpf oge, %21, %22 : vector<16x32xf32>
    %cst_7 = arith.constant 2.560000e+02 : f32
    %24 = vector.broadcast %cst_7 : f32 to vector<16x32xf32>
    %25 = arith.subf %21, %24 : vector<16x32xf32>
    %26 = arith.select %23, %25, %21 : vector<16x32xi1>, vector<16x32xf32>
    %27 = arith.truncf %26 : vector<16x32xf32> to vector<16x32xbf16>
    %c0_8 = arith.constant 0 : index
    %c0_9 = arith.constant 0 : index
    %28 = vector.load %arg3[%c0_8, %c0_9] : memref<32x128xbf16, #tpu.memory_space<vmem>>, vector<32x128xbf16>
    %cst_10 = arith.constant dense<0.000000e+00> : vector<16x128xf32>
    %29 = tpu.matmul %27, %28, %cst_10 {dimension_numbers = #tpu.dot_dimension_numbers<[1], [0], [0], [1], [0, 0, 1, 1], [], []>} : vector<16x32xbf16>, vector<32x128xbf16>, vector<16x128xf32> -> vector<16x128xf32>
    %30 = vector.extract_strided_slice %29 {offsets = [0, 0], sizes = [16, 2], strides = [1, 1]} : vector<16x128xf32> to vector<16x2xf32>
    %31 = vector.broadcast %1 : f32 to vector<16x2xf32>
    %32 = arith.mulf %30, %31 : vector<16x2xf32>
    %c0_11 = arith.constant 0 : index
    %c0_12 = arith.constant 0 : index
    %33 = vector.load %arg4[%c0_11, %c0_12] : memref<1x2xf32, #tpu.memory_space<vmem>>, vector<1x2xf32>
    %34 = vector.broadcast %33 : vector<1x2xf32> to vector<16x2xf32>
    %35 = arith.addf %32, %34 : vector<16x2xf32>
    %c0_13 = arith.constant 0 : index
    %c0_14 = arith.constant 0 : index
    %36 = vector.load %arg5[%c0_13, %c0_14] : memref<16x2xf32, #tpu.memory_space<vmem>>, vector<16x2xf32>
    tpu.vector_store %arg5[%c0_13, %c0_14], %35 {strides = array<i32>} : memref<16x2xf32, #tpu.memory_space<vmem>>, vector<16x2xf32>,
    return
  }
  func.func @transform_0(%arg0: i32) -> i32 {
    %c0_i32 = arith.constant 0 : i32
    %c0_i32_0 = arith.constant 0 : i32
    return %c0_i32 : i32
  }
  func.func @transform_1(%arg0: i32) -> (i32, i32) {
    %c0_i32 = arith.constant 0 : i32
    %c0_i32_0 = arith.constant 0 : i32
    return %arg0, %c0_i32 : i32, i32
  }
  func.func @transform_2(%arg0: i32) -> (i32, i32) {
    %c0_i32 = arith.constant 0 : i32
    %c0_i32_0 = arith.constant 0 : i32
    %c0_i32_1 = arith.constant 0 : i32
    return %c0_i32, %c0_i32_0 : i32, i32
  }
  func.func @transform_3(%arg0: i32) -> (i32, i32) {
    %c0_i32 = arith.constant 0 : i32
    %c0_i32_0 = arith.constant 0 : i32
    %c0_i32_1 = arith.constant 0 : i32
    return %c0_i32, %c0_i32_0 : i32, i32
  }
  func.func @transform_4(%arg0: i32) -> (i32, i32) {
    %c0_i32 = arith.constant 0 : i32
    %c0_i32_0 = arith.constant 0 : i32
    return %arg0, %c0_i32 : i32, i32
  }
}

</mosaic_0001>

<bundles_post_ra>
// kernel: _projection_layer.3
= control target key start
LH: loop header
LB: loop body
LE: loop exit
PB: predicated region body
PF: predicated region fallthrough
CT: control target
= control target key end

     0   :  { %9 = vsyncpa [#allocation3], 0  ;;  %s202_s18 = smov [#allocation2]   ;;  %s258_s0 = inlined_call_operand.vmem [shape: f32[2], index: 0, kind: input, shape index: {}]   ;;  %s259_s1 = inlined_call_operand.vmem [shape: f32[16,32], index: 1, kind: input, shape index: {}]   ;;  %s260_s2 = inlined_call_operand.vmem [shape: bf16[32,128], index: 2, kind: input, shape index: {}]   ;;  %s261_s3 = inlined_call_operand.vmem [shape: f32[1,2], index: 3, kind: input, shape index: {}]   ;;  %s262_s4 = inlined_call_operand.vmem [shape: f32[16,2], index: 4, kind: output, shape index: {}]  }
   0x1   :  { %s15_s17 = sshll.u32 %s258_s0, 4  ;;  %s16_s17 = int_to_ptr.vmem [resolvable:$true] %s15_s17 }
   0x2   :  { %18 = dma.vmem_to_smem %s16_s17, 16, %s202_s18, [#allocation3]  }
   0x3   :  { %200 = dma.done.wait [#allocation3], 16  }
   0x4   :  { %201 = vsyncadd [#allocation3], 4294967280 }
   0x5   :  { %29 = sfence }
   0x6   :  { %v33_v0 = vld [vmem:[%s259_s1] sm:$0xff]  ;;  %vm35_vm0 = vcmask 261120   ;;  %v34_v2 = vld [vmem:[%s259_s1 + $0x8] sm:$0xff]  ;;  %v203_v4 = vmov 32.0   ;;  %s31_s25 = sld [smem:[#allocation2]]  ;;  %vm141_vm12 = vcmask 15360  }
   0x7   :  { %v36_v1 = vsel %vm35_vm0, %v33_v0, 0.0  ;;  %v39_v3 = vsel %vm35_vm0, %v34_v2, 0.0  ;;  %182 = vrcp.f32 %v203_v4  ;;  %v162_v23 = vld [vmem:[%s260_s2 + $0x8] sm:$0xff]  ;;  %v161_v25 = vld [vmem:[%s260_s2] sm:$0xff]  ;;  %s149_s2 = sld [smem:[#allocation2 + $0x1]] }
   0x8   :  { %37 = vadd.xlane.f32.xlu0 %v36_v1  ;;  %124 = vmatpush.bf16.msra.mxu0 %v162_v23  ;;  %v181_v4 = vld [vmem:[%s261_s3] ss:$0 sm:$0xff] }
   0xc   :  { %125 = vmatpush.bf16.msra.mxu0 %v161_v25  ;;  %v87_v38 = vstv %s31_s25 }
   0xd   :  { %v183_v5 = vpop.eup %182 }
   0xe   :  { %v43_v6 = vmul.f32 32.0, %v183_v5  ;;  %vm47_vm1 = vweird.f32 %v183_v5 }
  0x10   :  { %40 = vadd.xlane.f32.xlu0 %v39_v3  ;;  %v44_v7 = vsub.f32 1.0, %v43_v6  ;;  %v132_v3 = vstv %s149_s2 }
  0x12   :  { %v45_v8 = vmul.f32 %v183_v5, %v44_v7 }
  0x14   :  { %v46_v9 = vadd.f32 %v183_v5, %v45_v8 }
  0x16   :  { %v48_v10 = vsel %vm47_vm1, %v183_v5, %v46_v9 }
  0x7b   :  { %v38_v11 = vpop.xlane.xlu0 %37 }
  0x7c   :  { %v49_v12 = vmul.f32 %v48_v10, %v38_v11 }
  0x7e   :  { %v51_v13 = vsub.f32 %v33_v0, %v49_v12 }
  0x80   :  { %v53_v14 = vmul.f32 %v51_v13, %v51_v13 }
  0x82   :  { %v55_v15 = vsel %vm35_vm0, %v53_v14, 0.0 }
  0x83   :  { %56 = vadd.xlane.f32.xlu1 %v55_v15  ;;  %v41_v16 = vpop.xlane.xlu0 %40 }
  0x84   :  { %v50_v17 = vmul.f32 %v48_v10, %v41_v16 }
  0x86   :  { %v52_v18 = vsub.f32 %v34_v2, %v50_v17 }
  0x88   :  { %v54_v19 = vmul.f32 %v52_v18, %v52_v18 }
  0x8a   :  { %v58_v20 = vsel %vm35_vm0, %v54_v19, 0.0 }
  0x8b   :  { %59 = vadd.xlane.f32.xlu1 %v58_v20 }
  0xf6   :  { %v57_v21 = vpop.xlane.xlu1 %56 }
  0xf7   :  { %v61_v22 = vmul.f32 %v57_v21, %v48_v10 }
  0xf9   :  { %v63_v24 = vadd.f32 1e-05, %v61_v22 }
  0xfb   :  { %184 = vrsqrt.f32 %v63_v24  ;;  %vm71_vm3 = vweird.f32 %v63_v24 }
  0xfe   :  { %v60_v26 = vpop.xlane.xlu1 %59 }
  0xff   :  { %v62_v27 = vmul.f32 %v60_v26, %v48_v10 }
 0x101   :  { %v185_v28 = vpop.eup %184  ;;  %v64_v29 = vadd.f32 1e-05, %v62_v27 }
 0x102   :  { %v66_v30 = vmul.f32 %v185_v28, %v63_v24  ;;  %vm72_vm2 = vweird.f32 %v185_v28 }
 0x103   :  { %186 = vrsqrt.f32 %v64_v29  ;;  %vm73_vm4 = vmor %vm71_vm3, %vm72_vm2  ;;  %vm81_vm6 = vweird.f32 %v64_v29 }
 0x104   :  { %v67_v31 = vmul.f32 %v185_v28, %v66_v30 }
 0x106   :  { %v68_v32 = vmul.f32 0.5, %v67_v31 }
 0x108   :  { %v69_v33 = vsub.f32 1.5, %v68_v32 }
 0x109   :  { %v187_v34 = vpop.eup %186 }
 0x10a   :  { %v70_v35 = vmul.f32 %v185_v28, %v69_v33  ;;  %v76_v36 = vmul.f32 %v187_v34, %v64_v29  ;;  %vm82_vm5 = vweird.f32 %v187_v34 }
 0x10b   :  { %vm83_vm7 = vmor %vm81_vm6, %vm82_vm5 }
 0x10c   :  { %v74_v37 = vsel %vm73_vm4, %v185_v28, %v70_v35  ;;  %v77_v39 = vmul.f32 %v187_v34, %v76_v36 }
 0x10d   :  { %v85_v40 = vmul.f32 %v74_v37, %v51_v13 }
 0x10e   :  { %v78_v41 = vmul.f32 0.5, %v77_v39 }
 0x10f   :  { %v88_v42 = vmul.f32 %v87_v38, %v85_v40 }
 0x110   :  { %v79_v43 = vsub.f32 1.5, %v78_v41 }
 0x111   :  { %v165_v44 = vcvt.f32.s32 %v88_v42  ;;  %v168_v51 = vand.u32 2147483648, %v88_v42  ;;  %v163_v52 = vand.u32 2147483647, %v88_v42 }
 0x112   :  { %v80_v45 = vmul.f32 %v187_v34, %v79_v43 }
 0x113   :  { %v166_v46 = vcvt.s32.f32 %v165_v44  ;;  %vm164_vm8 = vcmp.lt.f32.partialorder %v163_v52, 8388608.0 }
 0x114   :  { %v84_v47 = vsel %vm83_vm7, %v187_v34, %v80_v45 }
 0x115   :  { %v86_v48 = vmul.f32 %v84_v47, %v52_v18  ;;  %v167_v49 = vand.u32 2147483647, %v166_v46 }
 0x117   :  { %v89_v50 = vmul.f32 %v87_v38, %v86_v48  ;;  %v169_v53 = vor.u32 %v168_v51, %v167_v49 }
 0x119   :  { %v173_v54 = vcvt.f32.s32 %v89_v50  ;;  %v171_v56 = vand.u32 2147483647, %v89_v50  ;;  %v170_v57 = vsel %vm164_vm8, %v169_v53, %v88_v42  ;;  %v176_v59 = vand.u32 2147483648, %v89_v50 }
 0x11a   :  { %v150_v61 = vadd.f32 -256.0, %v170_v57  ;;  %vm92_vm10 = vcmp.ge.f32.partialorder %v170_v57, 128.0 }
 0x11b   :  { %v174_v55 = vcvt.s32.f32 %v173_v54  ;;  %vm172_vm9 = vcmp.lt.f32.partialorder %v171_v56, 8388608.0 }
 0x11c   :  { %v96_v0 = vsel %vm92_vm10, %v150_v61, %v170_v57 }
 0x11d   :  { %v175_v58 = vand.u32 2147483647, %v174_v55 }
 0x11f   :  { %v177_v60 = vor.u32 %v176_v59, %v175_v58 }
 0x121   :  { %v178_v62 = vsel %vm172_vm9, %v177_v60, %v89_v50 }
 0x122   :  { %vm93_vm11 = vcmp.ge.f32.partialorder %v178_v62, 128.0  ;;  %v151_v63 = vadd.f32 -256.0, %v178_v62 }
 0x124   :  { %v97_v1 = vsel %vm93_vm11, %v151_v63, %v178_v62 }
 0x125   :  { %v98_v2 = vpack.c.bf16 %v97_v1, %v96_v0 }
 0x127   :  { %160 = vmatmul.msk.bf16.vlgmr.msra.gmra.mxu0 %vm35_vm0, %v98_v2 }
 0x1a4   :  { %v127_v5 = vpop.f32.mrf.mxu0 }
 0x1a5   :  { %v133_v6 = vmul.f32 %v132_v3, %v127_v5 }
 0x1a7   :  { %v139_v7 = vadd.f32 %v181_v4, %v133_v6 }
 0x1a9   :  { %142 = vst.msk [vmem:[%s262_s4] sm:$0xff] %vm141_vm12, %v139_v7 }
 0x1ac   :  { %v129_v8 = vpop.f32.mrf.mxu0 }
 0x1ad   :  { %v134_v9 = vmul.f32 %v132_v3, %v129_v8 }
 0x1af   :  { %v140_v10 = vadd.f32 %v181_v4, %v134_v9 }
 0x1b1   :  { %143 = vst.msk [vmem:[%s262_s4 + $0x8] sm:$0xff] %vm141_vm12, %v140_v10 }
 0x1b2   :  { %148 = vsyncpa [#allocation3], 1 }

// kernel: _projection_layer.2
= control target key start
LH: loop header
LB: loop body
LE: loop exit
PB: predicated region body
PF: predicated region fallthrough
CT: control target
= control target key end

     0   :  { %6 = vsyncpa [#allocation3], 0  ;;  %s152_s9 = smov [#allocation2]   ;;  %s153_s11 = smov 128   ;;  %s178_s0 = inlined_call_operand.hbm [shape: f32[16,32], index: 0, kind: input, shape index: {}]   ;;  %s179_s1 = inlined_call_operand.vmem [shape: f32[1,8,128], index: 1, kind: output, shape index: {}]  }
   0x1   :  { %s11_s8 = sshll.u32 %s178_s0, 4  ;;  %s13_s10 = sshll.u32 %s152_s9, 4  ;;  %s12_s8 = int_to_ptr.hbm [resolvable:$true] %s11_s8  ;;  %s14_s10 = int_to_ptr.vmem [resolvable:$true] %s13_s10 }
   0x2   :  { %s154_s12 = smov 8  }
   0x3   :  { %19 = dma.hbm_to_vmem [thread:$0]  %s12_s8, 256, %s14_s10, [#allocation3], %s153_s11, %s153_s11, %s154_s12  }
   0x4   :  { %150 = dma.done.wait [#allocation3], 256  }
   0x5   :  { %151 = vsyncadd [#allocation3], 4294967040  ;;  %vm35_vm0 = vcmask 261120   ;;  %v24_v0 = vld [vmem:[#allocation2] sm:$0xff]  ;;  %v25_v2 = vld [vmem:[#allocation2 + $0x8] sm:$0xff]  ;;  %v155_v4 = vmov 32.0  }
   0x6   :  { %v36_v1 = vsel %vm35_vm0, %v24_v0, 0.0  ;;  %v39_v3 = vsel %vm35_vm0, %v25_v2, 0.0  ;;  %120 = vrcp.f32 %v155_v4 }
   0x7   :  { %37 = vadd.xlane.f32.xlu0 %v36_v1 }
   0xc   :  { %v121_v5 = vpop.eup %120 }
   0xd   :  { %v43_v6 = vmul.f32 32.0, %v121_v5  ;;  %vm47_vm1 = vweird.f32 %v121_v5 }
   0xf   :  { %40 = vadd.xlane.f32.xlu0 %v39_v3  ;;  %v44_v7 = vsub.f32 1.0, %v43_v6 }
  0x11   :  { %v45_v8 = vmul.f32 %v121_v5, %v44_v7 }
  0x13   :  { %v46_v9 = vadd.f32 %v121_v5, %v45_v8 }
  0x15   :  { %v48_v10 = vsel %vm47_vm1, %v121_v5, %v46_v9 }
  0x7a   :  { %v38_v11 = vpop.xlane.xlu0 %37 }
  0x7b   :  { %v49_v12 = vmul.f32 %v48_v10, %v38_v11 }
  0x7d   :  { %v51_v13 = vsub.f32 %v24_v0, %v49_v12 }
  0x7f   :  { %v53_v14 = vmul.f32 %v51_v13, %v51_v13  ;;  %v63_v39 = vand.u32 2147483647, %v51_v13 }
  0x81   :  { %v55_v15 = vsel %vm35_vm0, %v53_v14, 0.0 }
  0x82   :  { %56 = vadd.xlane.f32.xlu1 %v55_v15  ;;  %v41_v16 = vpop.xlane.xlu0 %40 }
  0x83   :  { %v50_v17 = vmul.f32 %v48_v10, %v41_v16 }
  0x85   :  { %v52_v18 = vsub.f32 %v25_v2, %v50_v17 }
  0x87   :  { %v54_v19 = vmul.f32 %v52_v18, %v52_v18  ;;  %v64_v41 = vand.u32 2147483647, %v52_v18 }
  0x89   :  { %v58_v20 = vsel %vm35_vm0, %v54_v19, 0.0 }
  0x8a   :  { %59 = vadd.xlane.f32.xlu1 %v58_v20 }
  0xf5   :  { %v57_v21 = vpop.xlane.xlu1 %56 }
  0xf6   :  { %v61_v22 = vmul.f32 %v57_v21, %v48_v10 }
  0xf8   :  { %v65_v23 = vadd.f32 1e-05, %v61_v22 }
  0xfa   :  { %122 = vrsqrt.f32 %v65_v23  ;;  %vm73_vm3 = vweird.f32 %v65_v23 }
  0xfd   :  { %v60_v24 = vpop.xlane.xlu1 %59 }
  0xfe   :  { %v62_v25 = vmul.f32 %v60_v24, %v48_v10 }
 0x100   :  { %v123_v26 = vpop.eup %122  ;;  %v66_v27 = vadd.f32 1e-05, %v62_v25 }
 0x101   :  { %v68_v28 = vmul.f32 %v123_v26, %v65_v23  ;;  %vm74_vm2 = vweird.f32 %v123_v26 }
 0x102   :  { %124 = vrsqrt.f32 %v66_v27  ;;  %vm75_vm4 = vmor %vm73_vm3, %vm74_vm2  ;;  %vm83_vm6 = vweird.f32 %v66_v27 }
 0x103   :  { %v69_v29 = vmul.f32 %v123_v26, %v68_v28 }
 0x105   :  { %v70_v30 = vmul.f32 0.5, %v69_v29 }
 0x107   :  { %v71_v31 = vsub.f32 1.5, %v70_v30 }
 0x108   :  { %v125_v32 = vpop.eup %124 }
 0x109   :  { %v78_v33 = vmul.f32 %v125_v32, %v66_v27  ;;  %v72_v35 = vmul.f32 %v123_v26, %v71_v31  ;;  %vm84_vm5 = vweird.f32 %v125_v32 }
 0x10a   :  { %vm85_vm7 = vmor %vm83_vm6, %vm84_vm5 }
 0x10b   :  { %v79_v34 = vmul.f32 %v125_v32, %v78_v33  ;;  %v76_v38 = vsel %vm75_vm4, %v123_v26, %v72_v35 }
 0x10c   :  { %v87_v42 = vmul.f32 %v76_v38, %v63_v39 }
 0x10d   :  { %v80_v36 = vmul.f32 0.5, %v79_v34 }
 0x10e   :  { %v95_v45 = vsel %vm35_vm0, %v87_v42, -inf }
 0x10f   :  { %v81_v37 = vsub.f32 1.5, %v80_v36 }
 0x111   :  { %v82_v40 = vmul.f32 %v125_v32, %v81_v37 }
 0x113   :  { %v86_v43 = vsel %vm85_vm7, %v125_v32, %v82_v40 }
 0x114   :  { %v88_v44 = vmul.f32 %v86_v43, %v64_v41 }
 0x116   :  { %v96_v46 = vsel %vm35_vm0, %v88_v44, -inf }
 0x117   :  { %v97_v47 = vmax.f32 %v95_v45, %v96_v46 }
 0x119   :  { %98 = vmax.xlane.f32.xlu2 %v97_v47 }
 0x18c   :  { %v99_v48 = vpop.xlane.xlu2 %98 }
 0x18d   :  { %v100_v49 = vrot.slane %v99_v48, 4 }
 0x18f   :  { %v101_v50 = vmax.f32 %v99_v48, %v100_v49 }
 0x191   :  { %v102_v51 = vrot.slane %v101_v50, 2 }
 0x193   :  { %v103_v52 = vmax.f32 %v101_v50, %v102_v51 }
 0x195   :  { %v104_v53 = vrot.slane %v103_v52, 1 }
 0x197   :  { %v105_v54 = vmax.f32 %v103_v52, %v104_v53 }
 0x199   :  { %114 = vpush %v105_v54 }
 0x1ca   :  { %s115_s0 = spop %114 }
 0x1cb   :  { %v107_v55 = vstv %s115_s0 }
 0x1cc   :  { %108 = vst [vmem:[%s179_s1] sm:$0xff] %v107_v55 }
 0x1cd   :  { %113 = vsyncpa [#allocation3], 1 }

</bundles_post_ra>
